<compile_context>
chip_gen: v5e
topology: v5e:2x2
jax: 0.10.0
libtpu: 0.0.40
codegen_flags: <defaults>
</compile_context>

<pallas_src>
import functools

import jax
import jax.numpy as jnp
import numpy as np
from jax.experimental import pallas as pl
from jax.experimental.pallas import tpu as pltpu


# ----------------------------- helpers --------------------------------------

def _cdiv(a, b):
    return (a + b - 1) // b


def _round_up(a, b):
    return _cdiv(a, b) * b


def _round_down(a, b):
    return (a // b) * b


def _vmem_budget_bytes():
    """Generation-aware VMEM budget with headroom."""
    phys = 64 * 1024 * 1024
    try:
        info = pltpu.get_tpu_info()
        phys = int(getattr(info, "vmem_capacity_bytes", phys))
    except Exception:
        pass
    if phys >= 128 * 1024 * 1024:       # v5e / v6e: 128 MiB physical
        return 96 * 1024 * 1024
    return 48 * 1024 * 1024             # v7x: 64 MiB physical


def _vmem_need_1d(tile_i, k_cols, in_c, out_c):
    """Rough VMEM estimate for the 1-D (full contraction slab) path."""
    bf2, f4 = 2, 4
    return (2 * tile_i * k_cols * bf2        # adj tile, double-buffered (bf16)
            + 2 * k_cols * in_c * bf2        # x slab (bf16)
            + 2 * in_c * out_c * bf2         # w (bf16)
            + k_cols * out_c * f4            # h intermediate (f32)
            + k_cols * out_c * bf2           # h cast to bf16
            + 2 * tile_i * out_c * f4        # output tile, double-buffered (f32)
            + (1 << 16))                     # slack


def _vmem_need_2d(tile_i, tile_k, in_c, out_c):
    """Rough VMEM estimate for the 2-D (tiled contraction) path."""
    bf2, f4 = 2, 4
    return (2 * tile_i * tile_k * bf2
            + 2 * tile_k * in_c * bf2
            + 2 * in_c * out_c * bf2
            + tile_k * out_c * f4
            + tile_k * out_c * bf2
            + 2 * tile_i * out_c * f4
            + (1 << 16))


# ----------------------------- kernels --------------------------------------

def _gcn_kernel_full(x_ref, w_ref, adj_ref, b_ref, o_ref):
    """1-D grid over row tiles; the whole contraction dim is resident.

    x_ref   : (n_cols, in_c)   bf16
    w_ref   : (in_c, out_c)    bf16
    adj_ref : (tile_i, n_cols) bf16
    b_ref   : (1, out_c)       f32
    o_ref   : (tile_i, out_c)  f32
    """
    h = jnp.dot(x_ref[...], w_ref[...], preferred_element_type=jnp.float32)
    acc = jnp.dot(adj_ref[...], h.astype(adj_ref.dtype),
                  preferred_element_type=jnp.float32)
    o_ref[...] = (acc + b_ref[...]).astype(o_ref.dtype)


def _gcn_kernel_tiled(x_ref, w_ref, adj_ref, b_ref, o_ref):
    """2-D grid (row tiles, contraction tiles); accumulates into o_ref (f32).

    The output block index is constant across k, so o_ref stays resident in
    VMEM and acts as the accumulator; bias is folded into the k == 0 init.
    """
    k = pl.program_id(1)

    @pl.when(k == 0)
    def _():
        o_ref[...] = jnp.broadcast_to(b_ref[...], o_ref.shape).astype(o_ref.dtype)

    h = jnp.dot(x_ref[...], w_ref[...], preferred_element_type=jnp.float32)
    o_ref[...] += jnp.dot(adj_ref[...], h.astype(adj_ref.dtype),
                          preferred_element_type=jnp.float32)


# ----------------------------- wrapper --------------------------------------

def graph_convolution_forward(x, w, b, adj, *, tile_i=None, tile_k=None,
                              vmem_budget=None):
    """y = adj @ (x @ w) + b.

    x: (n, in_c); w: (in_c, out_c); b: (out_c,); adj: dense (n, n).
    Returns f32 (n, out_c).
    """
    n, in_c = x.shape
    out_c = w.shape[1]
    assert adj.shape == (n, n)

    budget = int(vmem_budget) if vmem_budget is not None else _vmem_budget_bytes()

    # --- row tile (parallel axis) ---------------------------------------
    if tile_i is None:
        tile_i = 512
    tile_i = max(8, min(_round_up(int(tile_i), 8), _round_up(n, 8)))
    # Keep >= 2 row tiles where possible so both v7x TensorCores get work.
    while _cdiv(n, tile_i) < 2 and tile_i > 8:
        tile_i = max(8, _round_down(tile_i // 2, 8))
    n_rows = _round_up(n, tile_i)

    # --- contraction tile -------------------------------------------------
    full_k = _round_up(n, 128)
    if tile_k is None:
        if _vmem_need_1d(tile_i, full_k, in_c, out_c) <= budget:
            tile_k = full_k                        # collapse to a 1-D grid
        else:
            cap = 4096 if budget > (64 << 20) else 2048
            tile_k = max(128, _round_down(min(cap, full_k), 128))
            while (tile_k > 128
                   and _vmem_need_2d(tile_i, tile_k, in_c, out_c) > budget):
                tile_k = max(128, _round_down(tile_k // 2, 128))
    else:
        tile_k = max(128, min(_round_down(int(tile_k), 128), full_k))
    n_cols = _round_up(n, tile_k)

    # --- cast to bf16 and zero-pad to tile multiples ----------------------
    x_p = x.astype(jnp.bfloat16)
    if n_cols > n:
        x_p = jnp.pad(x_p, ((0, n_cols - n), (0, 0)))
    adj_p = adj.astype(jnp.bfloat16)
    if n_rows > n or n_cols > n:
        adj_p = jnp.pad(adj_p, ((0, n_rows - n), (0, n_cols - n)))
    w_bf = w.astype(jnp.bfloat16)
    b2 = b.reshape(1, out_c).astype(jnp.float32)

    num_row_tiles = n_rows // tile_i
    cost = pl.CostEstimate(
        flops=2 * n_rows * n_cols * out_c
              + 2 * n_cols * in_c * out_c * num_row_tiles,
        transcendentals=0,
        bytes_accessed=adj_p.size * 2 + x_p.size * 2 + w_bf.size * 2
                       + out_c * 4 + n_rows * out_c * 4,
    )

    if tile_k >= n_cols:
        # ------------------ 1-D grid: whole contraction resident ----------
        out_p = pl.pallas_call(
            _gcn_kernel_full,
            out_shape=jax.ShapeDtypeStruct((n_rows, out_c), jnp.float32),
            grid_spec=pltpu.PrefetchScalarGridSpec(
                num_scalar_prefetch=0,
                grid=(num_row_tiles,),
                in_specs=[
                    pl.BlockSpec((n_cols, in_c), lambda i: (0, 0)),
                    pl.BlockSpec((in_c, out_c), lambda i: (0, 0)),
                    pl.BlockSpec((tile_i, n_cols), lambda i: (i, 0)),
                    pl.BlockSpec((1, out_c), lambda i: (0, 0)),
                ],
                out_specs=pl.BlockSpec((tile_i, out_c), lambda i: (i, 0)),
            ),
            compiler_params=pltpu.CompilerParams(
                dimension_semantics=("parallel",),
                vmem_limit_bytes=budget,
            ),
            cost_estimate=cost,
        )(x_p, w_bf, adj_p, b2)
    else:
        # ------------------ 2-D grid: accumulate into resident output -----
        out_p = pl.pallas_call(
            _gcn_kernel_tiled,
            out_shape=jax.ShapeDtypeStruct((n_rows, out_c), jnp.float32),
            grid_spec=pltpu.PrefetchScalarGridSpec(
                num_scalar_prefetch=0,
                grid=(num_row_tiles, n_cols // tile_k),
                in_specs=[
                    pl.BlockSpec((tile_k, in_c), lambda i, k: (k, 0)),
                    pl.BlockSpec((in_c, out_c), lambda i, k: (0, 0)),
                    pl.BlockSpec((tile_i, tile_k), lambda i, k: (i, k)),
                    pl.BlockSpec((1, out_c), lambda i, k: (0, 0)),
                ],
                out_specs=pl.BlockSpec((tile_i, out_c), lambda i, k: (i, 0)),
            ),
            compiler_params=pltpu.CompilerParams(
                dimension_semantics=("parallel", "arbitrary"),
                vmem_limit_bytes=budget,
            ),
            cost_estimate=cost,
        )(x_p, w_bf, adj_p, b2)

    return out_p[:n] if n_rows > n else out_p


def graph_convolution_reference(x, w, b, adj):
    """Pure-JAX f32 reference mirroring the PyTorch forward."""
    h = jnp.dot(x, w, precision=jax.lax.Precision.HIGHEST)
    y = jnp.dot(adj, h, precision=jax.lax.Precision.HIGHEST)
    return y + b


# ----------------------------- demo / test ----------------------------------

if __name__ == "__main__":
    n = 256
    in_channels = 16
    out_channels = 128

    key = jax.random.PRNGKey(0)
    k1, k2, k3, k4 = jax.random.split(key, 4)

    x = jax.random.normal(k1, (n, in_channels), jnp.float32)

    # xavier_uniform init for w (as in reset_parameters).
    lim = float(np.sqrt(6.0 / (in_channels + out_channels)))
    w = jax.random.uniform(k2, (in_channels, out_channels), jnp.float32, -lim, lim)

    # The module initializes b to zeros; use small random values so the
    # bias-add path is actually exercised.
    b = 0.1 * jax.random.normal(k3, (out_channels,), jnp.float32)

    # Dense row-normalized adjacency standing in for the sparse adj.
    adj = jax.random.uniform(k4, (n, n), jnp.float32)
    adj = adj / jnp.sum(adj, axis=-1, keepdims=True)

    ref = graph_convolution_reference(x, w, b, adj)

    # Auto-tiled path (collapses to the 1-D full-contraction grid at this size).
    out = jax.block_until_ready(graph_convolution_forward(x, w, b, adj))
    np.testing.assert_allclose(np.asarray(out), np.asarray(ref),
                               rtol=2e-2, atol=2e-2)

    # Force the 2-D tiled-contraction / accumulator path as well.
    out2 = jax.block_until_ready(
        graph_convolution_forward(x, w, b, adj, tile_i=64, tile_k=128))
    np.testing.assert_allclose(np.asarray(out2), np.asarray(ref),
                               rtol=2e-2, atol=2e-2)

    print("KERNEL_OK")
</pallas_src>

<mosaic_0001>
module attributes {stable_mosaic.version = 11 : i64} {
  func.func @_gcn_kernel_full(%arg0: i32, %arg1: memref<256x16xbf16, #tpu.memory_space<vmem>>, %arg2: memref<16x128xbf16, #tpu.memory_space<vmem>>, %arg3: memref<128x256xbf16, #tpu.memory_space<vmem>>, %arg4: memref<1x128xf32, #tpu.memory_space<vmem>>, %arg5: memref<128x128xf32, #tpu.memory_space<vmem>>) attributes {dimension_semantics = [#tpu.dimension_semantics<parallel>], iteration_bounds = array<i64: 2>, scalar_prefetch = 0 : i64, scratch_operands = 0 : i64, tpu.core_type = #tpu.core_type<tc>, window_params = [{pipeline_mode = #tpu.pipeline_mode<synchronous>, transform_indices = @transform_0, window_bounds = array<i64: 256, 16>}, {pipeline_mode = #tpu.pipeline_mode<synchronous>, transform_indices = @transform_1, window_bounds = array<i64: 16, 128>}, {transform_indices = @transform_2, window_bounds = array<i64: 128, 256>}, {pipeline_mode = #tpu.pipeline_mode<synchronous>, transform_indices = @transform_3, window_bounds = array<i64: 1, 128>}, {transform_indices = @transform_4, window_bounds = array<i64: 128, 128>}]} {
    %c0 = arith.constant 0 : index
    %c0_0 = arith.constant 0 : index
    %0 = vector.load %arg1[%c0, %c0_0] : memref<256x16xbf16, #tpu.memory_space<vmem>>, vector<256x16xbf16>
    %c0_1 = arith.constant 0 : index
    %c0_2 = arith.constant 0 : index
    %1 = vector.load %arg2[%c0_1, %c0_2] : memref<16x128xbf16, #tpu.memory_space<vmem>>, vector<16x128xbf16>
    %cst = arith.constant dense<0.000000e+00> : vector<256x128xf32>
    %2 = tpu.matmul %0, %1, %cst {dimension_numbers = #tpu.dot_dimension_numbers<[1], [0], [0], [1], [0, 0, 1, 1], [], []>} : vector<256x16xbf16>, vector<16x128xbf16>, vector<256x128xf32> -> vector<256x128xf32>
    %c0_3 = arith.constant 0 : index
    %c0_4 = arith.constant 0 : index
    %3 = vector.load %arg3[%c0_3, %c0_4] : memref<128x256xbf16, #tpu.memory_space<vmem>>, vector<128x256xbf16>
    %4 = arith.truncf %2 : vector<256x128xf32> to vector<256x128xbf16>
    %cst_5 = arith.constant dense<0.000000e+00> : vector<128x128xf32>
    %5 = tpu.matmul %3, %4, %cst_5 {dimension_numbers = #tpu.dot_dimension_numbers<[1], [0], [0], [1], [0, 0, 1, 1], [], []>} : vector<128x256xbf16>, vector<256x128xbf16>, vector<128x128xf32> -> vector<128x128xf32>
    %c0_6 = arith.constant 0 : index
    %c0_7 = arith.constant 0 : index
    %6 = vector.load %arg4[%c0_6, %c0_7] : memref<1x128xf32, #tpu.memory_space<vmem>>, vector<1x128xf32>
    %7 = vector.broadcast %6 : vector<1x128xf32> to vector<128x128xf32>
    %8 = arith.addf %5, %7 : vector<128x128xf32>
    %c0_8 = arith.constant 0 : index
    %c0_9 = arith.constant 0 : index
    %9 = vector.load %arg5[%c0_8, %c0_9] : memref<128x128xf32, #tpu.memory_space<vmem>>, vector<128x128xf32>
    tpu.vector_store %arg5[%c0_8, %c0_9], %8 {strides = array<i32>} : memref<128x128xf32, #tpu.memory_space<vmem>>, vector<128x128xf32>,
    return
  }
  func.func @transform_0(%arg0: i32) -> (i32, i32) {
    %c0_i32 = arith.constant 0 : i32
    %c0_i32_0 = arith.constant 0 : i32
    %c0_i32_1 = arith.constant 0 : i32
    return %c0_i32, %c0_i32_0 : i32, i32
  }
  func.func @transform_1(%arg0: i32) -> (i32, i32) {
    %c0_i32 = arith.constant 0 : i32
    %c0_i32_0 = arith.constant 0 : i32
    %c0_i32_1 = arith.constant 0 : i32
    return %c0_i32, %c0_i32_0 : i32, i32
  }
  func.func @transform_2(%arg0: i32) -> (i32, i32) {
    %c0_i32 = arith.constant 0 : i32
    %c0_i32_0 = arith.constant 0 : i32
    return %arg0, %c0_i32 : i32, i32
  }
  func.func @transform_3(%arg0: i32) -> (i32, i32) {
    %c0_i32 = arith.constant 0 : i32
    %c0_i32_0 = arith.constant 0 : i32
    %c0_i32_1 = arith.constant 0 : i32
    return %c0_i32, %c0_i32_0 : i32, i32
  }
  func.func @transform_4(%arg0: i32) -> (i32, i32) {
    %c0_i32 = arith.constant 0 : i32
    %c0_i32_0 = arith.constant 0 : i32
    return %arg0, %c0_i32 : i32, i32
  }
}

</mosaic_0001>

<bundles_post_ra>
// kernel: tpu_custom_call.1
= control target key start
LH: loop header
LB: loop body
LE: loop exit
PB: predicated region body
PF: predicated region fallthrough
CT: control target
= control target key end

     0   :  { %9 = vsyncpa [#allocation3], 0  ;;  %s1458_s0 = inlined_call_operand.vmem [shape: bf16[256,16], index: 0, kind: input, shape index: {}]   ;;  %s1459_s1 = inlined_call_operand.vmem [shape: bf16[16,128], index: 1, kind: input, shape index: {}]   ;;  %s1460_s2 = inlined_call_operand.hbm [shape: bf16[256,256], index: 2, kind: input, shape index: {}]   ;;  %s1461_s3 = inlined_call_operand.vmem [shape: f32[1,128], index: 3, kind: input, shape index: {}]   ;;  %s1462_s4 = inlined_call_operand.hbm [shape: f32[256,128], index: 4, kind: output, shape index: {}]  }
   0x1   :  { %11 = vsyncpa [#allocation3 + $0x1], 0 }
   0x2   :  { %12 = vsyncpa [#allocation4], 0 }
   0x3   :  { %14 = vsyncpa [#allocation4 + $0x1], 0  ;;  %s1177_s15 = smov 0   ;;  %s1179_s16 = smov 0  }
   0x4   :  { %s1181_s17 = smov 0   ;;  %s1183_s18 = smov 0  }
   0x5 LB: > { %s1198_s19 = sadd.s32 4294967295, %s1146_s18   ;;  %s799_s20 = sadd.s32 4294967294, %s1146_s18   ;;  %s1146_s18 = sphi %s1183_s18, %s1472_s18   ;;  %s1142_s17 = sphi %s1181_s17, %s1471_s17   ;;  %s1138_s16 = sphi %s1179_s16, %s1470_s16   ;;  %s1134_s15 = sphi %s1177_s15, %s1469_s15  }
   0x6   : > { %s1202_s21 = sadd.s32 1, %s1146_s18   ;;  %s69_s22 = sadd.s32 1, %s1142_s17 }
   0x7   : > { %s66_s23 = ssub.s32 %s1146_s18, %s1202_s21  ;;  %p76_p0 = scmp.ne.s32.totalorder %s1142_s17, %s1138_s16 }
   0x8   : > { %p67_p1 = scmp.eq.s32.totalorder %s66_s23, 0  ;;  %p77_p2 = scmp.eq.s32.totalorder %s1146_s18, 0 }
   0x9   : > { %p82_p3 = scmp.ne.s32.totalorder %s1138_s16, %s1134_s15  ;;  %p83_p4 = scmp.eq.s32.totalorder %s1198_s19, 0 }
   0xa   : > { %s1214_s24 = scalar_select %p67_p1, %s1142_s17, %s69_s22  }
   0xb   : > { %p1216_p5 = por %p77_p2, %p76_p0  ;;  %p1220_p6 = por %p83_p4, %p82_p3 }
   0xc   : > { %p127_p7 = scmp.eq.s32.totalorder %s1198_s19, 1  ;;  %p133_p8 = scmp.eq.s32.totalorder %s799_s20, 1 }
   0xd   : > { %p1011_p10 = scmp.lt.s32.totalorder %s1146_s18, 2  ;;  %s162_s29 = sand.u32 1, %s1142_s17  }
   0xe   : > { %p1227_p11 = por %p127_p7, %p76_p0  ;;  %p1231_p12 = por %p133_p8, %p82_p3 }
   0xf   : > { %s963_s30 = sshll.u32 %s1146_s18, 7  ;;  %s802_s5 = sshll.u32 %s162_s29, 7 }
  0x10   : > { %s172_s8 = scalar_lea.hbm %s1460_s2, %s963_s30  ;;  %s166_s10 = scalar_lea.vmem [#allocation2], %s802_s5 }
  0x11   : > { %s173_s9 = sshll.u32 %s172_s8, 4  ;;  %s175_s11 = sshll.u32 %s166_s10, 4  ;;  %s174_s9 = int_to_ptr.hbm [resolvable:$true] %s173_s9  ;;  %s176_s11 = int_to_ptr.vmem [resolvable:$true] %s175_s11 }
  0x12   : > { %p1242_p13 = pnand %p1011_p10, %p1216_p5  ;;  %p806_p0 = scmp.ge.s32.totalorder %s1146_s18, 1 }
  0x13   : > { %p183_p1 = scmp.lt.s32.totalorder %s1146_s18, 3  ;;  %s163_s13 = scalar_lea.sflag [#allocation3], %s162_s29 }
  0x14   : > { %s1050_s14 = sshra.s32 %s174_s9, 4  ;;  %p1054_p3 = pneg %p1242_p13  ;;  %s1051_s14 = int_to_ptr.hbm [resolvable:$true] %s1050_s14 }
  0x15   : > { %s1052_s20 = scalar_lea.hbm %s1051_s14, 128  ;;  %s1057_s25 = scalar_lea.hbm %s1460_s2, 256 }
  0x16   : > { %p1053_p2 = scmp.ne.s32.totalorder %s1051_s14, %s1052_s20  ;;  %p1058_p5 = scmp.lt.s32.totalorder %s1051_s14, %s1460_s2 }
  0x17   : > { %p1059_p8 = scmp.lt.s32.totalorder %s1057_s25, %s1052_s20 }
  0x18   : > { %p1055_p4 = pnand %p1054_p3, %p1053_p2 }
  0x19   : > { %p1060_p10 = por %p1059_p8, %p1058_p5 }
  0x1a   : > { %p1056_p7 = pneg %p1055_p4 }
  0x1c   : > { %p1061_p9 = pnand %p1060_p10, %p1056_p7 }
  0x1e   : > { %1064 = shalt.err (!%p1061_p9)
}
  0x1f   : > { %s1148_s29 = smov 128   ;;  %s1149_s6 = smov 8  }
  0x20   : > { %1006 = dma.hbm_to_vmem [thread:$0]  (!%p1242_p13), %s174_s9, 2048, %s176_s11, %s163_s13, %s1148_s29, %s1148_s29, %s1149_s6  }
  0x21   : > { %p184_p2 = pnand %p806_p0, %p183_p1 }
  0x22   : > { %s1263_s7 = sand.u32 (!%p184_p2), 1, %s1138_s16  }
  0x23   : > { %187 = sbr.rel (%p184_p2) target bundleno = 578 (0x242), region = 36  ;;  %s807_s8 = sshll.u32 (!%p184_p2), %s1263_s7, 7 }
  0x24   : > { %s190_s10 = scalar_lea.sflag (!%p184_p2), [#allocation3], %s1263_s7  ;;  %s1269_s14 = scalar_lea.vmem (!%p184_p2), [#allocation2], %s807_s8 }
  0x28   : > { %1125 = dma.done.wait (%p1220_p6), %s190_s10, 2048  }
  0x29   : > { %1127 = vsyncadd (%p1220_p6), %s190_s10, 4294965248  ;;  %v980_v0 = vld [vmem:[%s1459_s1] sm:$0xff]  ;;  %v973_v2 = vld [vmem:[%s1458_s0 + $0x48] sm:$0xff]  ;;  %vm342_vm0 = vcmask 130048   ;;  %s1391_s25 = scalar_lea.vmem [#allocation5], %s807_s8  ;;  %s997_s8 = sshll.u32 %s1198_s19, 7 }
  0x2a   : > { %v964_v1 = vld [vmem:[%s1458_s0] sm:$0xff]  ;;  %398 = vmatpush.bf16.msra.mxu0 %v980_v0  ;;  %998 = vmatpush.bf16.msra.mxu3 %v980_v0  ;;  %v965_v3 = vld [vmem:[%s1458_s0 + $0x8] sm:$0xff]  ;;  %v974_v4 = vld [vmem:[%s1458_s0 + $0x50] sm:$0xff]  ;;  %s722_s5 = scalar_lea.hbm %s1462_s4, %s997_s8  ;;  %s723_s29 = sshll.u32 %s1391_s25, 4  ;;  %s724_s29 = int_to_ptr.vmem [resolvable:$true] %s723_s29 }
  0x2b   : > { %v966_v5 = vld [vmem:[%s1458_s0 + $0x10] sm:$0xff]  ;;  %v975_v6 = vld [vmem:[%s1458_s0 + $0x58] sm:$0xff]  ;;  %v976_v8 = vld [vmem:[%s1458_s0 + $0x60] sm:$0xff]  ;;  %s725_s6 = sshll.u32 %s722_s5, 4  ;;  %s711_s10 = scalar_lea.sflag [#allocation4], %s1263_s7  ;;  %s726_s6 = int_to_ptr.hbm [resolvable:$true] %s725_s6 }
  0x2c   : > { %v967_v7 = vld [vmem:[%s1458_s0 + $0x18] sm:$0xff]  ;;  %v968_v9 = vld [vmem:[%s1458_s0 + $0x20] sm:$0xff]  ;;  %v977_v10 = vld [vmem:[%s1458_s0 + $0x68] sm:$0xff]  ;;  %s1094_s9 = sshra.s32 %s726_s6, 4  ;;  %s1100_s13 = scalar_lea.hbm %s1462_s4, 256  ;;  %s1095_s9 = int_to_ptr.hbm [resolvable:$true] %s1094_s9 }
  0x2d   : > { %877 = vmatmul.msk.bf16.vlgmr.msra.gmra.mxu0 %vm342_vm0, %v964_v1  ;;  %886 = vmatmul.msk.bf16.vlgmr.msra.gmra.mxu3 %vm342_vm0, %v973_v2  ;;  %v969_v11 = vld [vmem:[%s1458_s0 + $0x28] sm:$0xff]  ;;  %v978_v12 = vld [vmem:[%s1458_s0 + $0x70] sm:$0xff]  ;;  %v979_v14 = vld [vmem:[%s1458_s0 + $0x78] sm:$0xff]  ;;  %s1096_s19 = scalar_lea.hbm %s1095_s9, 128  ;;  %p1101_p0 = scmp.lt.s32.totalorder %s1095_s9, %s1462_s4 }
  0x2e   : > { %v970_v13 = vld [vmem:[%s1458_s0 + $0x30] sm:$0xff]  ;;  %v971_v15 = vld [vmem:[%s1458_s0 + $0x38] sm:$0xff]  ;;  %v972_v16 = vld [vmem:[%s1458_s0 + $0x40] sm:$0xff]  ;;  %p1097_p6 = scmp.ne.s32.totalorder %s1095_s9, %s1096_s19  ;;  %p1102_p1 = scmp.lt.s32.totalorder %s1100_s13, %s1096_s19 }
  0x2f   : > { %v981_v0 = vld [vmem:[%s1269_s14 + $0x4] sm:$0xf]  ;;  %v897_v1 = vld [vmem:[%s1269_s14 + $0x8] sm:$0xf0] }
  0x30   : > { %p1098_p9 = pnand %p1097_p6, %p1227_p11  ;;  %p1103_p3 = por %p1102_p1, %p1101_p0 }
  0x32   : > { %p1099_p13 = pneg %p1098_p9 }
  0x34   : > { %p1104_p4 = pnand %p1103_p3, %p1099_p13 }
  0x3d   : > { %878 = vmatmul.msk.bf16.gmra.mxu0 %vm342_vm0, %v965_v3  ;;  %887 = vmatmul.msk.bf16.gmra.mxu3 %vm342_vm0, %v974_v4  ;;  %v900_v3 = vor.u32 %v981_v0, %v897_v1  ;;  %v895_v4 = vld [vmem:[%s1269_s14] sm:$0xf] }
  0x4d   : > { %879 = vmatmul.msk.bf16.gmra.mxu0 %vm342_vm0, %v966_v5  ;;  %888 = vmatmul.msk.bf16.gmra.mxu3 %vm342_vm0, %v975_v6  ;;  %v982_v5 = vld [vmem:[%s1269_s14 + $0x4] sm:$0xf0] }
  0x4e   : > { %v896_v6 = vor.u32 %v982_v5, %v895_v4 }
  0x5d   : > { %880 = vmatmul.msk.bf16.gmra.mxu0 %vm342_vm0, %v967_v7  ;;  %889 = vmatmul.msk.bf16.gmra.mxu3 %vm342_vm0, %v976_v8  ;;  %v983_v7 = vld [vmem:[%s1269_s14 + $0x14] sm:$0xf]  ;;  %v905_v8 = vld [vmem:[%s1269_s14 + $0x18] sm:$0xf0] }
  0x6d   : > { %881 = vmatmul.msk.bf16.gmra.mxu0 %vm342_vm0, %v968_v9  ;;  %890 = vmatmul.msk.bf16.gmra.mxu3 %vm342_vm0, %v977_v10  ;;  %v908_v9 = vor.u32 %v983_v7, %v905_v8  ;;  %v903_v10 = vld [vmem:[%s1269_s14 + $0x10] sm:$0xf] }
  0x7d   : > { %882 = vmatmul.msk.bf16.gmra.mxu0 %vm342_vm0, %v969_v11  ;;  %891 = vmatmul.msk.bf16.gmra.mxu3 %vm342_vm0, %v978_v12  ;;  %v984_v11 = vld [vmem:[%s1269_s14 + $0x14] sm:$0xf0] }
  0x7e   : > { %v904_v12 = vor.u32 %v984_v11, %v903_v10 }
  0x8d   : > { %883 = vmatmul.msk.bf16.gmra.mxu0 %vm342_vm0, %v970_v13  ;;  %892 = vmatmul.msk.bf16.gmra.mxu3 %vm342_vm0, %v979_v14  ;;  %v985_v13 = vld [vmem:[%s1269_s14 + $0x24] sm:$0xf]  ;;  %v913_v14 = vld [vmem:[%s1269_s14 + $0x28] sm:$0xf0] }
  0x9d   : > { %884 = vmatmul.msk.bf16.gmra.mxu0 %vm342_vm0, %v971_v15  ;;  %v916_v15 = vor.u32 %v985_v13, %v913_v14 }
  0xaa   : > { %v1341_v17 = vpop.f32.mrf.mxu0 }
  0xad   : > { %885 = vmatmul.msk.bf16.gmra.mxu0 %vm342_vm0, %v972_v16  ;;  %v911_v16 = vld [vmem:[%s1269_s14 + $0x20] sm:$0xf] }
  0xb0   : > { %v445_v18 = vpop.f32.mrf.mxu3 }
  0xb2   : > { %v1344_v19 = vpop.f32.mrf.mxu0 }
  0xb3   : > { %v496_v20 = vpack.c.bf16 %v1344_v19, %v1341_v17  ;;  %v986_v17 = vld [vmem:[%s1269_s14 + $0x24] sm:$0xf0]  ;;  %v987_v19 = vld [vmem:[%s1269_s14 + $0x34] sm:$0xf] }
  0xb8   : > { %v447_v21 = vpop.f32.mrf.mxu3 }
  0xb9   : > { %v505_v22 = vpack.c.bf16 %v447_v21, %v445_v18  ;;  %v912_v18 = vor.u32 %v986_v17, %v911_v16 }
  0xba   : > { %v405_v23 = vpop.f32.mrf.mxu0 }
  0xc0   : > { %v450_v24 = vpop.f32.mrf.mxu3 }
  0xc2   : > { %v407_v25 = vpop.f32.mrf.mxu0 }
  0xc3   : > { %v497_v26 = vpack.c.bf16 %v407_v25, %v405_v23  ;;  %v988_v23 = vld [vmem:[%s1269_s14 + $0x34] sm:$0xf0]  ;;  %v989_v25 = vld [vmem:[%s1269_s14 + $0x44] sm:$0xf] }
  0xc8   : > { %v452_v27 = vpop.f32.mrf.mxu3 }
  0xc9   : > { %v506_v28 = vpack.c.bf16 %v452_v27, %v450_v24 }
  0xca   : > { %v410_v29 = vpop.f32.mrf.mxu0 }
  0xd0   : > { %v455_v30 = vpop.f32.mrf.mxu3 }
  0xd2   : > { %v412_v31 = vpop.f32.mrf.mxu0 }
  0xd3   : > { %v498_v32 = vpack.c.bf16 %v412_v31, %v410_v29  ;;  %v990_v29 = vld [vmem:[%s1269_s14 + $0x44] sm:$0xf0]  ;;  %v991_v31 = vld [vmem:[%s1269_s14 + $0x54] sm:$0xf] }
  0xd8   : > { %v457_v33 = vpop.f32.mrf.mxu3 }
  0xd9   : > { %v507_v34 = vpack.c.bf16 %v457_v33, %v455_v30 }
  0xda   : > { %v415_v35 = vpop.f32.mrf.mxu0 }
  0xe0   : > { %v460_v36 = vpop.f32.mrf.mxu3 }
  0xe2   : > { %v417_v37 = vpop.f32.mrf.mxu0 }
  0xe3   : > { %v499_v38 = vpack.c.bf16 %v417_v37, %v415_v35  ;;  %v992_v35 = vld [vmem:[%s1269_s14 + $0x54] sm:$0xf0]  ;;  %v993_v37 = vld [vmem:[%s1269_s14 + $0x64] sm:$0xf] }
  0xe8   : > { %v462_v39 = vpop.f32.mrf.mxu3 }
  0xe9   : > { %v508_v58 = vpack.c.bf16 %v462_v39, %v460_v36 }
  0xea   : > { %v420_v40 = vpop.f32.mrf.mxu0 }
  0xf0   : > { %v465_v41 = vpop.f32.mrf.mxu3 }
  0xf2   : > { %v422_v42 = vpop.f32.mrf.mxu0 }
  0xf3   : > { %v500_v62 = vpack.c.bf16 %v422_v42, %v420_v40  ;;  %v943_v40 = vld [vmem:[%s1269_s14 + $0x60] sm:$0xf] }
  0xf8   : > { %v467_v43 = vpop.f32.mrf.mxu3 }
  0xf9   : > { %v509_v55 = vpack.c.bf16 %v467_v43, %v465_v41  ;;  %v994_v41 = vld [vmem:[%s1269_s14 + $0x64] sm:$0xf0]  ;;  %v995_v43 = vld [vmem:[%s1269_s14 + $0x74] sm:$0xf] }
  0xfa   : > { %v425_v44 = vpop.f32.mrf.mxu0  ;;  %v944_v42 = vor.u32 %v994_v41, %v943_v40 }
 0x100   : > { %v470_v45 = vpop.f32.mrf.mxu3 }
 0x102   : > { %v427_v46 = vpop.f32.mrf.mxu0 }
 0x103   : > { %v501_v61 = vpack.c.bf16 %v427_v46, %v425_v44  ;;  %v953_v44 = vld [vmem:[%s1269_s14 + $0x78] sm:$0xf0]  ;;  %v951_v46 = vld [vmem:[%s1269_s14 + $0x70] sm:$0xf] }
 0x108   : > { %v472_v47 = vpop.f32.mrf.mxu3 }
 0x109   : > { %v510_v54 = vpack.c.bf16 %v472_v47, %v470_v45  ;;  %v956_v45 = vor.u32 %v995_v43, %v953_v44  ;;  %v996_v47 = vld [vmem:[%s1269_s14 + $0x74] sm:$0xf0] }
 0x10a   : > { %v430_v48 = vpop.f32.mrf.mxu0 }
 0x110   : > { %v475_v49 = vpop.f32.mrf.mxu3 }
 0x112   : > { %v432_v50 = vpop.f32.mrf.mxu0 }
 0x113   : > { %v502_v59 = vpack.c.bf16 %v432_v50, %v430_v48  ;;  %v952_v48 = vor.u32 %v996_v47, %v951_v46  ;;  %v1386_v50 = vld [vmem:[%s1461_s3] ss:$0 sm:$0xff] }
 0x118   : > { %v477_v51 = vpop.f32.mrf.mxu3 }
 0x119   : > { %v511_v52 = vpack.c.bf16 %v477_v51, %v475_v49 }
 0x11a   : > { %v435_v53 = vpop.f32.mrf.mxu0 }
 0x11b   : > { %645 = vmatpush.bf16.msra.mxu2 %v511_v52 }
 0x11f   : > { %646 = vmatpush.bf16.msra.mxu2 %v510_v54 }
 0x122   : > { %v437_v56 = vpop.f32.mrf.mxu0 }
 0x123   : > { %647 = vmatpush.bf16.msra.mxu2 %v509_v55  ;;  %v503_v57 = vpack.c.bf16 %v437_v56, %v435_v53 }
 0x125   : > { %596 = vmatpush.bf16.msra.mxu1 %v503_v57 }
 0x127   : > { %648 = vmatpush.bf16.msra.mxu2 %v508_v58 }
 0x129   : > { %597 = vmatpush.bf16.msra.mxu1 %v502_v59 }
 0x12a   : > { %v440_v60 = vpop.f32.mrf.mxu0 }
 0x12b   : > { %649 = vmatpush.bf16.msra.mxu2 %v507_v34  ;;  %v935_v34 = vld [vmem:[%s1269_s14 + $0x50] sm:$0xf] }
 0x12c   : > { %v936_v36 = vor.u32 %v992_v35, %v935_v34 }
 0x12d   : > { %598 = vmatpush.bf16.msra.mxu1 %v501_v61 }
 0x12f   : > { %650 = vmatpush.bf16.msra.mxu2 %v506_v28  ;;  %v927_v28 = vld [vmem:[%s1269_s14 + $0x40] sm:$0xf] }
 0x130   : > { %v928_v30 = vor.u32 %v990_v29, %v927_v28 }
 0x131   : > { %599 = vmatpush.bf16.msra.mxu1 %v500_v62 }
 0x132   : > { %v442_v63 = vpop.f32.mrf.mxu0 }
 0x133   : > { %651 = vmatpush.bf16.msra.mxu2 %v505_v22  ;;  %v504_v2 = vpack.c.bf16 %v442_v63, %v440_v60  ;;  %v919_v22 = vld [vmem:[%s1269_s14 + $0x30] sm:$0xf] }
 0x134   : > { %v920_v24 = vor.u32 %v988_v23, %v919_v22 }
 0x135   : > { %600 = vmatpush.bf16.msra.mxu1 %v499_v38  ;;  %v945_v38 = vld [vmem:[%s1269_s14 + $0x68] sm:$0xf0] }
 0x136   : > { %v948_v39 = vor.u32 %v993_v37, %v945_v38 }
 0x137   : > { %652 = vmatpush.bf16.msra.mxu2 %v504_v2 }
 0x139   : > { %601 = vmatpush.bf16.msra.mxu1 %v498_v32  ;;  %v937_v32 = vld [vmem:[%s1269_s14 + $0x58] sm:$0xf0] }
 0x13a   : > { %653 = vmatmul.bf16.vlgmr.msra.gmra.mxu2 %v900_v3  ;;  %v940_v33 = vor.u32 %v991_v31, %v937_v32 }
 0x13d   : > { %602 = vmatpush.bf16.msra.mxu1 %v497_v26  ;;  %v929_v26 = vld [vmem:[%s1269_s14 + $0x48] sm:$0xf0] }
 0x13e   : > { %v932_v27 = vor.u32 %v989_v25, %v929_v26 }
 0x141   : > { %603 = vmatpush.bf16.msra.mxu1 %v496_v20  ;;  %v921_v20 = vld [vmem:[%s1269_s14 + $0x38] sm:$0xf0] }
 0x142   : > { %v924_v21 = vor.u32 %v987_v19, %v921_v20 }
 0x144   : > { %604 = vmatmul.bf16.vlgmr.msra.gmra.mxu1 %v896_v6 }
 0x14a   : > { %658 = vmatmul.bf16.gmra.mxu2 %v908_v9 }
 0x154   : > { %609 = vmatmul.bf16.gmra.mxu1 %v904_v12 }
 0x15a   : > { %663 = vmatmul.bf16.gmra.mxu2 %v916_v15 }
 0x164   : > { %614 = vmatmul.bf16.gmra.mxu1 %v912_v18 }
 0x16a   : > { %668 = vmatmul.bf16.gmra.mxu2 %v924_v21 }
 0x174   : > { %619 = vmatmul.bf16.gmra.mxu1 %v920_v24 }
 0x17a   : > { %673 = vmatmul.bf16.gmra.mxu2 %v932_v27 }
 0x184   : > { %624 = vmatmul.bf16.gmra.mxu1 %v928_v30 }
 0x18a   : > { %678 = vmatmul.bf16.gmra.mxu2 %v940_v33 }
 0x194   : > { %629 = vmatmul.bf16.gmra.mxu1 %v936_v36 }
 0x19a   : > { %683 = vmatmul.bf16.gmra.mxu2 %v948_v39 }
 0x1a4   : > { %634 = vmatmul.bf16.gmra.mxu1 %v944_v42 }
 0x1aa   : > { %688 = vmatmul.bf16.gmra.mxu2 %v956_v45 }
 0x1b4   : > { %639 = vmatmul.bf16.gmra.mxu1 %v952_v48 }
 0x1bd   : > { %v654_v49 = vpop.f32.mrf.mxu2 }
 0x1c1   : > { %v605_v51 = vpop.f32.mrf.mxu1 }
 0x1c2   : > { %v606_v52 = vadd.f32 %v1386_v50, %v605_v51 }
 0x1c4   : > { %v655_v53 = vadd.f32 %v654_v49, %v606_v52 }
 0x1c5   : > { %v656_v54 = vpop.f32.mrf.mxu2 }
 0x1c6   : > { %694 = vst [vmem:[%s1391_s25] sm:$0xff] %v655_v53 }
 0x1c9   : > { %v607_v55 = vpop.f32.mrf.mxu1 }
 0x1ca   : > { %v608_v56 = vadd.f32 %v1386_v50, %v607_v55 }
 0x1cc   : > { %v657_v57 = vadd.f32 %v656_v54, %v608_v56 }
 0x1cd   : > { %v659_v58 = vpop.f32.mrf.mxu2 }
 0x1ce   : > { %695 = vst [vmem:[%s1391_s25 + $0x8] sm:$0xff] %v657_v57 }
 0x1d1   : > { %v610_v59 = vpop.f32.mrf.mxu1 }
 0x1d2   : > { %v611_v60 = vadd.f32 %v1386_v50, %v610_v59 }
 0x1d4   : > { %v660_v61 = vadd.f32 %v659_v58, %v611_v60 }
 0x1d5   : > { %v661_v62 = vpop.f32.mrf.mxu2 }
 0x1d6   : > { %696 = vst [vmem:[%s1391_s25 + $0x10] sm:$0xff] %v660_v61 }
 0x1d9   : > { %v612_v63 = vpop.f32.mrf.mxu1 }
 0x1da   : > { %v613_v0 = vadd.f32 %v1386_v50, %v612_v63 }
 0x1dc   : > { %v662_v1 = vadd.f32 %v661_v62, %v613_v0 }
 0x1dd   : > { %v664_v2 = vpop.f32.mrf.mxu2 }
 0x1de   : > { %697 = vst [vmem:[%s1391_s25 + $0x18] sm:$0xff] %v662_v1 }
 0x1e1   : > { %v615_v3 = vpop.f32.mrf.mxu1 }
 0x1e2   : > { %v616_v4 = vadd.f32 %v1386_v50, %v615_v3 }
 0x1e4   : > { %v665_v5 = vadd.f32 %v664_v2, %v616_v4 }
 0x1e5   : > { %v666_v6 = vpop.f32.mrf.mxu2 }
 0x1e6   : > { %698 = vst [vmem:[%s1391_s25 + $0x20] sm:$0xff] %v665_v5 }
 0x1e9   : > { %v617_v7 = vpop.f32.mrf.mxu1 }
 0x1ea   : > { %v618_v8 = vadd.f32 %v1386_v50, %v617_v7 }
 0x1ec   : > { %v667_v9 = vadd.f32 %v666_v6, %v618_v8 }
 0x1ed   : > { %v669_v10 = vpop.f32.mrf.mxu2 }
 0x1ee   : > { %699 = vst [vmem:[%s1391_s25 + $0x28] sm:$0xff] %v667_v9 }
 0x1f1   : > { %v620_v11 = vpop.f32.mrf.mxu1 }
 0x1f2   : > { %v621_v12 = vadd.f32 %v1386_v50, %v620_v11 }
 0x1f4   : > { %v670_v13 = vadd.f32 %v669_v10, %v621_v12 }
 0x1f5   : > { %v671_v14 = vpop.f32.mrf.mxu2 }
 0x1f6   : > { %700 = vst [vmem:[%s1391_s25 + $0x30] sm:$0xff] %v670_v13 }
 0x1f9   : > { %v622_v15 = vpop.f32.mrf.mxu1 }
 0x1fa   : > { %v623_v16 = vadd.f32 %v1386_v50, %v622_v15 }
 0x1fc   : > { %v672_v17 = vadd.f32 %v671_v14, %v623_v16 }
 0x1fd   : > { %v674_v18 = vpop.f32.mrf.mxu2 }
 0x1fe   : > { %701 = vst [vmem:[%s1391_s25 + $0x38] sm:$0xff] %v672_v17 }
 0x201   : > { %v625_v19 = vpop.f32.mrf.mxu1 }
 0x202   : > { %v626_v20 = vadd.f32 %v1386_v50, %v625_v19 }
 0x204   : > { %v675_v21 = vadd.f32 %v674_v18, %v626_v20 }
 0x205   : > { %v676_v22 = vpop.f32.mrf.mxu2 }
 0x206   : > { %702 = vst [vmem:[%s1391_s25 + $0x40] sm:$0xff] %v675_v21 }
 0x209   : > { %v627_v23 = vpop.f32.mrf.mxu1 }
 0x20a   : > { %v628_v24 = vadd.f32 %v1386_v50, %v627_v23 }
 0x20c   : > { %v677_v25 = vadd.f32 %v676_v22, %v628_v24 }
 0x20d   : > { %v679_v26 = vpop.f32.mrf.mxu2 }
 0x20e   : > { %703 = vst [vmem:[%s1391_s25 + $0x48] sm:$0xff] %v677_v25 }
 0x211   : > { %v630_v27 = vpop.f32.mrf.mxu1 }
 0x212   : > { %v631_v28 = vadd.f32 %v1386_v50, %v630_v27 }
 0x214   : > { %v680_v29 = vadd.f32 %v679_v26, %v631_v28 }
 0x215   : > { %v681_v30 = vpop.f32.mrf.mxu2 }
 0x216   : > { %704 = vst [vmem:[%s1391_s25 + $0x50] sm:$0xff] %v680_v29 }
 0x219   : > { %v632_v31 = vpop.f32.mrf.mxu1 }
 0x21a   : > { %v633_v32 = vadd.f32 %v1386_v50, %v632_v31 }
 0x21c   : > { %v682_v33 = vadd.f32 %v681_v30, %v633_v32 }
 0x21d   : > { %v684_v34 = vpop.f32.mrf.mxu2 }
 0x21e   : > { %705 = vst [vmem:[%s1391_s25 + $0x58] sm:$0xff] %v682_v33 }
 0x221   : > { %v635_v35 = vpop.f32.mrf.mxu1 }
 0x222   : > { %v636_v36 = vadd.f32 %v1386_v50, %v635_v35 }
 0x224   : > { %v685_v37 = vadd.f32 %v684_v34, %v636_v36 }
 0x225   : > { %v686_v38 = vpop.f32.mrf.mxu2 }
 0x226   : > { %706 = vst [vmem:[%s1391_s25 + $0x60] sm:$0xff] %v685_v37 }
 0x229   : > { %v637_v39 = vpop.f32.mrf.mxu1 }
 0x22a   : > { %v638_v40 = vadd.f32 %v1386_v50, %v637_v39 }
 0x22c   : > { %v687_v41 = vadd.f32 %v686_v38, %v638_v40 }
 0x22d   : > { %v689_v42 = vpop.f32.mrf.mxu2 }
 0x22e   : > { %707 = vst [vmem:[%s1391_s25 + $0x68] sm:$0xff] %v687_v41 }
 0x231   : > { %v640_v43 = vpop.f32.mrf.mxu1 }
 0x232   : > { %v641_v44 = vadd.f32 %v1386_v50, %v640_v43 }
 0x234   : > { %v690_v45 = vadd.f32 %v689_v42, %v641_v44 }
 0x235   : > { %v691_v48 = vpop.f32.mrf.mxu2 }
 0x236   : > { %708 = vst [vmem:[%s1391_s25 + $0x70] sm:$0xff] %v690_v45 }
 0x239   : > { %v642_v46 = vpop.f32.mrf.mxu1 }
 0x23a   : > { %v643_v47 = vadd.f32 %v1386_v50, %v642_v46 }
 0x23c   : > { %v692_v49 = vadd.f32 %v691_v48, %v643_v47 }
 0x23e   : > { %709 = vst [vmem:[%s1391_s25 + $0x78] sm:$0xff] %v692_v49 }
 0x23f   : > { %1107 = shalt.err (!%p1104_p4)
}
 0x240   : > { %s1150_s7 = smov 128   ;;  %s1151_s26 = smov 8  }
 0x241   : > { %1001 = dma.vmem_to_hbm [thread:$0]  (%p1227_p11), %s724_s29, 2048, %s726_s6, %s711_s10, %s1150_s7, %s1150_s7, %s1151_s26  }
 0x242 PF: > { %s740_s23 = sand.u32 1, %s1134_s15   ;;  %p1468_p7 = scmp.ge.s32.totalorder %s1146_s18, 2 }
 0x243   : > { %s741_s25 = scalar_lea.sflag [#allocation4], %s740_s23 }
 0x244   : > { %p1008_p5 = pnand %p1468_p7, %p1231_p12 }
 0x246   : > { %p1009_p8 = pneg %p1008_p5 }
 0x248   : > { %1129 = dma.done.wait (%p1009_p8), %s741_s25, 2048  }
 0x249   : > { %1131 = vsyncadd (%p1009_p8), %s741_s25, 4294965248  ;;  %p17_p10 = scmp.ge.s32.totalorder %s1202_s21, 4   ;;  %s1469_s15 = smov %s1138_s16 }
 0x24a   : > { %s1470_s16 = smov %s1142_s17  ;;  %s1471_s17 = smov %s1214_s24 }
 0x24b   : > { %s1472_s18 = smov %s1202_s21  ;;  %19 = sbr.rel (!%p17_p10) target bundleno = 5 (0x5), region = 81 }
 0x250   :  { %747 = vsyncpa [#allocation3], 1 }
 0x251   :  { %749 = vsyncpa [#allocation3 + $0x1], 1 }
 0x252   :  { %750 = vsyncpa [#allocation4], 1 }
 0x253   :  { %752 = vsyncpa [#allocation4 + $0x1], 1 }

</bundles_post_ra>
